<compile_context>
chip_gen: v5e
topology: v5e:2x2
jax: 0.10.0
libtpu: 0.0.40
codegen_flags: <defaults>
</compile_context>

<pallas_src>
import jax
import jax.numpy as jnp
from jax.experimental import pallas as pl
from jax.experimental.pallas import tpu as pltpu

EPS = 1e-5


def _round_up(x, m):
    return (x + m - 1) // m * m


def _pick_spatial_tile(hw_out, cap=2048):
    """Largest spatial tile (multiple of 128, <= cap) whose zero-padding waste stays ~<=6%."""
    kmax = min(cap, _round_up(hw_out, 128)) // 128
    for k in range(kmax, 0, -1):
        ts = 128 * k
        hwp = _round_up(hw_out, ts)
        if hwp - hw_out <= hwp // 16:
            return ts, hwp
    return 128, _round_up(hw_out, 128)


# ----------------------------- Pallas kernels ------------------------------

def _moments_kernel(x_ref, o_ref):
    # Per-lane partial sums of x and x*x over the batch (sublane) axis; tiny scalar finish on host.
    xb = x_ref[...]
    o_ref[0:1, :] = jnp.sum(xb, axis=0, keepdims=True)
    o_ref[1:2, :] = jnp.sum(xb * xb, axis=0, keepdims=True)


def _conv_stats_kernel(xm_ref, e_ref, w_ref, s_ref, q_ref):
    # Pass 1: in-kernel patch construction + conv, reduced on-chip to per-tile BN2 partial stats.
    #   xm_ref: (1, 18, ts)  [x taps | mask taps], spatial along lanes
    #   e_ref : (9V, 18)     row (t*V+v) holds A_v at col t and B_v at col 9+t   (f32)
    #   w_ref : (64, 9V)     conv weights, tap-major/view-minor columns          (bf16)
    xT = xm_ref[0]                                                              # (18, ts)
    zT = jnp.dot(e_ref[...], xT, preferred_element_type=jnp.float32)           # (9V, ts)
    pT = jnp.maximum(zT, 0.0).astype(jnp.bfloat16)                             # ReLU(BN1(project)) taps
    yT = jnp.dot(w_ref[...], pT, preferred_element_type=jnp.float32)           # (64, ts)
    s_ref[...] = jnp.sum(yT, axis=1, keepdims=True)[None]                      # (1, 64, 1)
    q_ref[...] = jnp.sum(yT * yT, axis=1, keepdims=True)[None]


def _conv_bn_relu_kernel(xm_ref, e_ref, w_ref, s_ref, t_ref, o_ref):
    # Pass 2: recompute the conv (cheaper than a y2 HBM round trip) and apply BN2 affine + ReLU,
    # writing the output channels-major (NCHW folded into the kernel; lane-dense stores).
    xT = xm_ref[0]
    zT = jnp.dot(e_ref[...], xT, preferred_element_type=jnp.float32)
    pT = jnp.maximum(zT, 0.0).astype(jnp.bfloat16)
    yT = jnp.dot(w_ref[...], pT, preferred_element_type=jnp.float32)           # (64, ts)
    o_ref[...] = jnp.maximum(yT * s_ref[...] + t_ref[...], 0.0)[None]          # (1, 64, ts)


# ----------------------------- Pallas wrappers ------------------------------

def _x_moment_partials(x2d):
    n, hw = x2d.shape
    return pl.pallas_call(
        _moments_kernel,
        out_shape=jax.ShapeDtypeStruct((2, hw), jnp.float32),
        grid=(1,),
        in_specs=[pl.BlockSpec((n, hw), lambda i: (0, 0))],
        out_specs=pl.BlockSpec((2, hw), lambda i: (0, 0)),
    )(x2d)


def _conv_stats(xm, e_t, w2_t, ts):
    n, ktap, hwp = xm.shape
    cout, kv = w2_t.shape
    ntiles = hwp // ts
    return pl.pallas_call(
        _conv_stats_kernel,
        out_shape=(jax.ShapeDtypeStruct((n * ntiles, cout, 1), jnp.float32),
                   jax.ShapeDtypeStruct((n * ntiles, cout, 1), jnp.float32)),
        grid=(n, ntiles),
        in_specs=[pl.BlockSpec((1, ktap, ts), lambda b, t: (b, 0, t)),
                  pl.BlockSpec((kv, ktap), lambda b, t: (0, 0)),
                  pl.BlockSpec((cout, kv), lambda b, t: (0, 0))],
        out_specs=(pl.BlockSpec((1, cout, 1), lambda b, t: (b * ntiles + t, 0, 0)),
                   pl.BlockSpec((1, cout, 1), lambda b, t: (b * ntiles + t, 0, 0))),
        compiler_params=pltpu.CompilerParams(
            dimension_semantics=("parallel", "parallel")),
    )(xm, e_t, w2_t)


def _conv_bn_relu(xm, e_t, w2_t, s2, t2, ts):
    n, ktap, hwp = xm.shape
    cout, kv = w2_t.shape
    ntiles = hwp // ts
    return pl.pallas_call(
        _conv_bn_relu_kernel,
        out_shape=jax.ShapeDtypeStruct((n, cout, hwp), jnp.float32),
        grid=(n, ntiles),
        in_specs=[pl.BlockSpec((1, ktap, ts), lambda b, t: (b, 0, t)),
                  pl.BlockSpec((kv, ktap), lambda b, t: (0, 0)),
                  pl.BlockSpec((cout, kv), lambda b, t: (0, 0)),
                  pl.BlockSpec((cout, 1), lambda b, t: (0, 0)),
                  pl.BlockSpec((cout, 1), lambda b, t: (0, 0))],
        out_specs=pl.BlockSpec((1, cout, ts), lambda b, t: (b, 0, t)),
        compiler_params=pltpu.CompilerParams(
            dimension_semantics=("parallel", "parallel")),
    )(xm, e_t, w2_t, s2, t2)


# ----------------------------- forward pass ---------------------------------

@jax.jit
def multiview_projection_forward(x_nchw, params):
    n, cin, h, w = x_nchw.shape
    assert cin == 1
    v = params["w1"].shape[0]
    cout = params["w2"].shape[0]

    x_img = x_nchw.reshape(n, h, w)

    # --- scalar moments of x: single Pallas pass, reads x once, no pad/reshape copy ---
    x2d = x_img.reshape(n, h * w)
    if n * h * w * 4 > (8 << 20):
        # TODO(synk): tile the moments reduction instead of this XLA fallback for very large x.
        mx = jnp.mean(x2d)
        vx = jnp.var(x2d)
    else:
        mom = _x_moment_partials(x2d)
        cnt = float(n * h * w)
        mx = jnp.sum(mom[0]) / cnt
        vx = jnp.maximum(jnp.sum(mom[1]) / cnt - mx * mx, 0.0)   # clamp: no NaN from cancellation

    # --- stage-1 fold: BN1 batch stats follow analytically from the scalar moments of x ---
    w1, b1 = params["w1"], params["b1"]
    mean1 = w1 * mx + b1
    var1 = w1 * w1 * vx                       # biased variance of y1, per view (training-mode BN)
    s1 = params["g1"] * jax.lax.rsqrt(var1 + EPS)
    a_vec = s1 * w1                           # a1 = relu(x*A_v + B_v)
    b_vec = params["bt1"] + s1 * (b1 - mean1)

    # --- compact tap gather, channels-major / spatial-minor: (N, 18, HWp) ---
    ho = (h + 2 - 3) // 2 + 1
    wo = (w + 2 - 3) // 2 + 1
    hw_out = ho * wo
    xpad = jnp.pad(x_img, ((0, 0), (1, 1), (1, 1)))
    mpad = jnp.pad(jnp.ones((n, h, w), jnp.float32), ((0, 0), (1, 1), (1, 1)))
    taps = []
    for src in (xpad, mpad):                 # 9 x-taps, then 9 pad-mask taps (1 inside, 0 at padding)
        for di in range(3):
            for dj in range(3):
                taps.append(src[:, di:di + 2 * ho - 1:2, dj:dj + 2 * wo - 1:2])
    xm = jnp.stack(taps, axis=1).reshape(n, 18, hw_out)
    ts, hwp = _pick_spatial_tile(hw_out)      # lane-dense spatial tile, capped at 2048
    xm = jnp.pad(xm, ((0, 0), (0, 0), (0, hwp - hw_out)))   # padded lanes -> exact zeros everywhere
    # TODO(synk): the 9 mask taps are data-independent; a border-only correction could halve xm.

    # --- expansion matrix E^T (9V,18) and conv weights W2^T (64,9V); b2 cancels inside BN2 ---
    eye9 = jnp.eye(9, dtype=jnp.float32)
    e_t = jnp.concatenate([jnp.kron(eye9, a_vec.reshape(v, 1)),
                           jnp.kron(eye9, b_vec.reshape(v, 1))], axis=1)          # (9V, 18) f32
    w2_t = jnp.transpose(params["w2"], (0, 2, 3, 1)).reshape(cout, 9 * v).astype(jnp.bfloat16)

    # --- pass 1: conv + on-chip reduction to per-tile BN2 partials (y2 never written to HBM) ---
    s_part, q_part = _conv_stats(xm, e_t, w2_t, ts)
    p_rows = n * hw_out
    mean2 = jnp.sum(s_part[:, :, 0], axis=0) / p_rows
    var2 = jnp.maximum(jnp.sum(q_part[:, :, 0], axis=0) / p_rows - mean2 * mean2, 0.0)
    s2 = params["g2"] * jax.lax.rsqrt(var2 + EPS)
    t2 = params["bt2"] - mean2 * s2

    # --- pass 2: recompute conv, fused BN2 affine + ReLU, channels-major output (NCHW folded in) ---
    out_t = _conv_bn_relu(xm, e_t, w2_t, s2.reshape(cout, 1), t2.reshape(cout, 1), ts)
    return out_t[:, :, :hw_out].reshape(n, cout, ho, wo)


# ----------------------------- reference + harness --------------------------

def _reference_forward(x_nchw, params):
    """Pure-JAX reference mirroring the PyTorch module in train() mode."""
    y1 = x_nchw * params["w1"].reshape(1, -1, 1, 1) + params["b1"].reshape(1, -1, 1, 1)
    m1 = jnp.mean(y1, axis=(0, 2, 3), keepdims=True)
    v1 = jnp.var(y1, axis=(0, 2, 3), keepdims=True)
    a1 = jnp.maximum((y1 - m1) * jax.lax.rsqrt(v1 + EPS) * params["g1"].reshape(1, -1, 1, 1)
                     + params["bt1"].reshape(1, -1, 1, 1), 0.0)
    y2 = jax.lax.conv_general_dilated(a1, params["w2"], (2, 2), ((1, 1), (1, 1)),
                                      dimension_numbers=("NCHW", "OIHW", "NCHW"))
    y2 = y2 + params["b2"].reshape(1, -1, 1, 1)
    m2 = jnp.mean(y2, axis=(0, 2, 3), keepdims=True)
    v2 = jnp.var(y2, axis=(0, 2, 3), keepdims=True)
    return jnp.maximum((y2 - m2) * jax.lax.rsqrt(v2 + EPS) * params["g2"].reshape(1, -1, 1, 1)
                       + params["bt2"].reshape(1, -1, 1, 1), 0.0)


def init_params(views, key):
    ks = jax.random.split(key, 8)
    return {
        "w1": 0.5 * jax.random.normal(ks[0], (views,), jnp.float32),
        "b1": 0.1 * jax.random.normal(ks[1], (views,), jnp.float32),
        "g1": 1.0 + 0.1 * jax.random.normal(ks[2], (views,), jnp.float32),
        "bt1": 0.1 * jax.random.normal(ks[3], (views,), jnp.float32),
        "w2": 0.1 * jax.random.normal(ks[4], (64, views, 3, 3), jnp.float32),
        "b2": 0.1 * jax.random.normal(ks[5], (64,), jnp.float32),
        "g2": 1.0 + 0.1 * jax.random.normal(ks[6], (64,), jnp.float32),
        "bt2": 0.1 * jax.random.normal(ks[7], (64,), jnp.float32),
    }


if __name__ == "__main__":
    views = 8
    n, h, w = 2, 16, 16

    key = jax.random.PRNGKey(0)
    k_x, k_p = jax.random.split(key)
    x = jax.random.normal(k_x, (n, 1, h, w), jnp.float32)   # NCHW, in_channels=1
    params = init_params(views, k_p)

    out = multiview_projection_forward(x, params)
    out = jax.block_until_ready(out)
    assert out.shape == (n, 64, h // 2, w // 2), out.shape
    assert out.dtype == jnp.float32

    ref = _reference_forward(x, params)
    max_err = float(jnp.max(jnp.abs(out - ref)))
    assert max_err < 5e-2, f"mismatch vs reference: {max_err}"

    print("KERNEL_OK")
</pallas_src>

<mosaic_0001>
module attributes {stable_mosaic.version = 11 : i64} {
  func.func @_moments_kernel(%arg0: i32, %arg1: memref<2x256xf32, #tpu.memory_space<vmem>>, %arg2: memref<2x256xf32, #tpu.memory_space<vmem>>) attributes {dimension_semantics = [#tpu.dimension_semantics<arbitrary>], iteration_bounds = array<i64: 1>, scalar_prefetch = 0 : i64, scratch_operands = 0 : i64, tpu.core_type = #tpu.core_type<tc>, window_params = [{pipeline_mode = #tpu.pipeline_mode<synchronous>, transform_indices = @transform_0, window_bounds = array<i64: 2, 256>}, {pipeline_mode = #tpu.pipeline_mode<synchronous>, transform_indices = @transform_1, window_bounds = array<i64: 2, 256>}]} {
    %c0 = arith.constant 0 : index
    %c0_0 = arith.constant 0 : index
    %0 = vector.load %arg1[%c0, %c0_0] : memref<2x256xf32, #tpu.memory_space<vmem>>, vector<2x256xf32>
    %cst = arith.constant dense<0.000000e+00> : vector<256xf32>
    %1 = vector.multi_reduction <add>, %0, %cst [0] : vector<2x256xf32> to vector<256xf32>
    %2 = vector.shape_cast %1 : vector<256xf32> to vector<1x256xf32>
    %c0_1 = arith.constant 0 : index
    %c0_2 = arith.constant 0 : index
    %3 = vector.load %arg2[%c0_1, %c0_2] : memref<2x256xf32, #tpu.memory_space<vmem>>, vector<1x256xf32>
    tpu.vector_store %arg2[%c0_1, %c0_2], %2 {strides = array<i32>} : memref<2x256xf32, #tpu.memory_space<vmem>>, vector<1x256xf32>,
    %4 = arith.mulf %0, %0 : vector<2x256xf32>
    %cst_3 = arith.constant dense<0.000000e+00> : vector<256xf32>
    %5 = vector.multi_reduction <add>, %4, %cst_3 [0] : vector<2x256xf32> to vector<256xf32>
    %6 = vector.shape_cast %5 : vector<256xf32> to vector<1x256xf32>
    %c1 = arith.constant 1 : index
    %c0_4 = arith.constant 0 : index
    %7 = vector.load %arg2[%c1, %c0_4] : memref<2x256xf32, #tpu.memory_space<vmem>>, vector<1x256xf32>
    tpu.vector_store %arg2[%c1, %c0_4], %6 {strides = array<i32>} : memref<2x256xf32, #tpu.memory_space<vmem>>, vector<1x256xf32>,
    return
  }
  func.func @transform_0(%arg0: i32) -> (i32, i32) {
    %c0_i32 = arith.constant 0 : i32
    %c0_i32_0 = arith.constant 0 : i32
    %c0_i32_1 = arith.constant 0 : i32
    return %c0_i32, %c0_i32_0 : i32, i32
  }
  func.func @transform_1(%arg0: i32) -> (i32, i32) {
    %c0_i32 = arith.constant 0 : i32
    %c0_i32_0 = arith.constant 0 : i32
    %c0_i32_1 = arith.constant 0 : i32
    return %c0_i32, %c0_i32_0 : i32, i32
  }
}

module attributes {stable_mosaic.version = 11 : i64} {
  func.func @_conv_stats_kernel(%arg0: i32, %arg1: i32, %arg2: memref<1x18x128xf32, #tpu.memory_space<vmem>>, %arg3: memref<72x18xf32, #tpu.memory_space<vmem>>, %arg4: memref<64x72xbf16, #tpu.memory_space<vmem>>, %arg5: memref<1x64x1xf32, #tpu.memory_space<vmem>>, %arg6: memref<1x64x1xf32, #tpu.memory_space<vmem>>) attributes {dimension_semantics = [#tpu.dimension_semantics<parallel>, #tpu.dimension_semantics<parallel>], iteration_bounds = array<i64: 2, 1>, scalar_prefetch = 0 : i64, scratch_operands = 0 : i64, tpu.core_type = #tpu.core_type<tc>, window_params = [{transform_indices = @transform_0, window_bounds = array<i64: 1, 18, 128>}, {pipeline_mode = #tpu.pipeline_mode<synchronous>, transform_indices = @transform_1, window_bounds = array<i64: 72, 18>}, {pipeline_mode = #tpu.pipeline_mode<synchronous>, transform_indices = @transform_2, window_bounds = array<i64: 64, 72>}, {transform_indices = @transform_3, window_bounds = array<i64: 1, 64, 1>}, {transform_indices = @transform_4, window_bounds = array<i64: 1, 64, 1>}]} {
    %c0 = arith.constant 0 : index
    %c0_0 = arith.constant 0 : index
    %c0_1 = arith.constant 0 : index
    %0 = vector.load %arg2[%c0, %c0_0, %c0_1] : memref<1x18x128xf32, #tpu.memory_space<vmem>>, vector<1x18x128xf32>
    %1 = vector.shape_cast %0 : vector<1x18x128xf32> to vector<18x128xf32>
    %c0_2 = arith.constant 0 : index
    %c0_3 = arith.constant 0 : index
    %2 = vector.load %arg3[%c0_2, %c0_3] : memref<72x18xf32, #tpu.memory_space<vmem>>, vector<72x18xf32>
    %cst = arith.constant dense<0.000000e+00> : vector<72x128xf32>
    %3 = tpu.matmul %2, %1, %cst {dimension_numbers = #tpu.dot_dimension_numbers<[1], [0], [0], [1], [0, 0, 1, 1], [], []>} : vector<72x18xf32>, vector<18x128xf32>, vector<72x128xf32> -> vector<72x128xf32>
    %cst_4 = arith.constant 0.000000e+00 : f32
    %4 = vector.broadcast %cst_4 : f32 to vector<72x128xf32>
    %5 = arith.maximumf %3, %4 : vector<72x128xf32>
    %6 = arith.truncf %5 : vector<72x128xf32> to vector<72x128xbf16>
    %c0_5 = arith.constant 0 : index
    %c0_6 = arith.constant 0 : index
    %7 = vector.load %arg4[%c0_5, %c0_6] : memref<64x72xbf16, #tpu.memory_space<vmem>>, vector<64x72xbf16>
    %cst_7 = arith.constant dense<0.000000e+00> : vector<64x128xf32>
    %8 = tpu.matmul %7, %6, %cst_7 {dimension_numbers = #tpu.dot_dimension_numbers<[1], [0], [0], [1], [0, 0, 1, 1], [], []>} : vector<64x72xbf16>, vector<72x128xbf16>, vector<64x128xf32> -> vector<64x128xf32>
    %cst_8 = arith.constant dense<0.000000e+00> : vector<64xf32>
    %9 = vector.multi_reduction <add>, %8, %cst_8 [1] : vector<64x128xf32> to vector<64xf32>
    %10 = vector.shape_cast %9 : vector<64xf32> to vector<64x1xf32>
    %11 = vector.shape_cast %10 : vector<64x1xf32> to vector<1x64x1xf32>
    %c0_9 = arith.constant 0 : index
    %c0_10 = arith.constant 0 : index
    %c0_11 = arith.constant 0 : index
    %12 = vector.load %arg5[%c0_9, %c0_10, %c0_11] : memref<1x64x1xf32, #tpu.memory_space<vmem>>, vector<1x64x1xf32>
    tpu.vector_store %arg5[%c0_9, %c0_10, %c0_11], %11 {strides = array<i32>} : memref<1x64x1xf32, #tpu.memory_space<vmem>>, vector<1x64x1xf32>,
    %13 = arith.mulf %8, %8 : vector<64x128xf32>
    %cst_12 = arith.constant dense<0.000000e+00> : vector<64xf32>
    %14 = vector.multi_reduction <add>, %13, %cst_12 [1] : vector<64x128xf32> to vector<64xf32>
    %15 = vector.shape_cast %14 : vector<64xf32> to vector<64x1xf32>
    %16 = vector.shape_cast %15 : vector<64x1xf32> to vector<1x64x1xf32>
    %c0_13 = arith.constant 0 : index
    %c0_14 = arith.constant 0 : index
    %c0_15 = arith.constant 0 : index
    %17 = vector.load %arg6[%c0_13, %c0_14, %c0_15] : memref<1x64x1xf32, #tpu.memory_space<vmem>>, vector<1x64x1xf32>
    tpu.vector_store %arg6[%c0_13, %c0_14, %c0_15], %16 {strides = array<i32>} : memref<1x64x1xf32, #tpu.memory_space<vmem>>, vector<1x64x1xf32>,
    return
  }
  func.func @transform_0(%arg0: i32, %arg1: i32) -> (i32, i32, i32) {
    %c0_i32 = arith.constant 0 : i32
    %c0_i32_0 = arith.constant 0 : i32
    return %arg0, %c0_i32, %arg1 : i32, i32, i32
  }
  func.func @transform_1(%arg0: i32, %arg1: i32) -> (i32, i32) {
    %c0_i32 = arith.constant 0 : i32
    %c0_i32_0 = arith.constant 0 : i32
    %c0_i32_1 = arith.constant 0 : i32
    return %c0_i32, %c0_i32_0 : i32, i32
  }
  func.func @transform_2(%arg0: i32, %arg1: i32) -> (i32, i32) {
    %c0_i32 = arith.constant 0 : i32
    %c0_i32_0 = arith.constant 0 : i32
    %c0_i32_1 = arith.constant 0 : i32
    return %c0_i32, %c0_i32_0 : i32, i32
  }
  func.func @transform_3(%arg0: i32, %arg1: i32) -> (i32, i32, i32) {
    %c1_i32 = arith.constant 1 : i32
    %0 = arith.muli %arg0, %c1_i32 : i32
    %1 = arith.addi %0, %arg1 : i32
    %c0_i32 = arith.constant 0 : i32
    %c0_i32_0 = arith.constant 0 : i32
    %c0_i32_1 = arith.constant 0 : i32
    return %1, %c0_i32, %c0_i32_0 : i32, i32, i32
  }
  func.func @transform_4(%arg0: i32, %arg1: i32) -> (i32, i32, i32) {
    %c1_i32 = arith.constant 1 : i32
    %0 = arith.muli %arg0, %c1_i32 : i32
    %1 = arith.addi %0, %arg1 : i32
    %c0_i32 = arith.constant 0 : i32
    %c0_i32_0 = arith.constant 0 : i32
    %c0_i32_1 = arith.constant 0 : i32
    return %1, %c0_i32, %c0_i32_0 : i32, i32, i32
  }
}

module attributes {stable_mosaic.version = 11 : i64} {
  func.func @_conv_bn_relu_kernel(%arg0: i32, %arg1: i32, %arg2: memref<1x18x128xf32, #tpu.memory_space<vmem>>, %arg3: memref<72x18xf32, #tpu.memory_space<vmem>>, %arg4: memref<64x72xbf16, #tpu.memory_space<vmem>>, %arg5: memref<64x1xf32, #tpu.memory_space<vmem>>, %arg6: memref<64x1xf32, #tpu.memory_space<vmem>>, %arg7: memref<1x64x128xf32, #tpu.memory_space<vmem>>) attributes {dimension_semantics = [#tpu.dimension_semantics<parallel>, #tpu.dimension_semantics<parallel>], iteration_bounds = array<i64: 2, 1>, scalar_prefetch = 0 : i64, scratch_operands = 0 : i64, tpu.core_type = #tpu.core_type<tc>, window_params = [{transform_indices = @transform_0, window_bounds = array<i64: 1, 18, 128>}, {pipeline_mode = #tpu.pipeline_mode<synchronous>, transform_indices = @transform_1, window_bounds = array<i64: 72, 18>}, {pipeline_mode = #tpu.pipeline_mode<synchronous>, transform_indices = @transform_2, window_bounds = array<i64: 64, 72>}, {pipeline_mode = #tpu.pipeline_mode<synchronous>, transform_indices = @transform_3, window_bounds = array<i64: 64, 1>}, {pipeline_mode = #tpu.pipeline_mode<synchronous>, transform_indices = @transform_4, window_bounds = array<i64: 64, 1>}, {transform_indices = @transform_5, window_bounds = array<i64: 1, 64, 128>}]} {
    %c0 = arith.constant 0 : index
    %c0_0 = arith.constant 0 : index
    %c0_1 = arith.constant 0 : index
    %0 = vector.load %arg2[%c0, %c0_0, %c0_1] : memref<1x18x128xf32, #tpu.memory_space<vmem>>, vector<1x18x128xf32>
    %1 = vector.shape_cast %0 : vector<1x18x128xf32> to vector<18x128xf32>
    %c0_2 = arith.constant 0 : index
    %c0_3 = arith.constant 0 : index
    %2 = vector.load %arg3[%c0_2, %c0_3] : memref<72x18xf32, #tpu.memory_space<vmem>>, vector<72x18xf32>
    %cst = arith.constant dense<0.000000e+00> : vector<72x128xf32>
    %3 = tpu.matmul %2, %1, %cst {dimension_numbers = #tpu.dot_dimension_numbers<[1], [0], [0], [1], [0, 0, 1, 1], [], []>} : vector<72x18xf32>, vector<18x128xf32>, vector<72x128xf32> -> vector<72x128xf32>
    %cst_4 = arith.constant 0.000000e+00 : f32
    %4 = vector.broadcast %cst_4 : f32 to vector<72x128xf32>
    %5 = arith.maximumf %3, %4 : vector<72x128xf32>
    %6 = arith.truncf %5 : vector<72x128xf32> to vector<72x128xbf16>
    %c0_5 = arith.constant 0 : index
    %c0_6 = arith.constant 0 : index
    %7 = vector.load %arg4[%c0_5, %c0_6] : memref<64x72xbf16, #tpu.memory_space<vmem>>, vector<64x72xbf16>
    %cst_7 = arith.constant dense<0.000000e+00> : vector<64x128xf32>
    %8 = tpu.matmul %7, %6, %cst_7 {dimension_numbers = #tpu.dot_dimension_numbers<[1], [0], [0], [1], [0, 0, 1, 1], [], []>} : vector<64x72xbf16>, vector<72x128xbf16>, vector<64x128xf32> -> vector<64x128xf32>
    %c0_8 = arith.constant 0 : index
    %c0_9 = arith.constant 0 : index
    %9 = vector.load %arg5[%c0_8, %c0_9] : memref<64x1xf32, #tpu.memory_space<vmem>>, vector<64x1xf32>
    %10 = vector.broadcast %9 : vector<64x1xf32> to vector<64x128xf32>
    %11 = arith.mulf %8, %10 : vector<64x128xf32>
    %c0_10 = arith.constant 0 : index
    %c0_11 = arith.constant 0 : index
    %12 = vector.load %arg6[%c0_10, %c0_11] : memref<64x1xf32, #tpu.memory_space<vmem>>, vector<64x1xf32>
    %13 = vector.broadcast %12 : vector<64x1xf32> to vector<64x128xf32>
    %14 = arith.addf %11, %13 : vector<64x128xf32>
    %cst_12 = arith.constant 0.000000e+00 : f32
    %15 = vector.broadcast %cst_12 : f32 to vector<64x128xf32>
    %16 = arith.maximumf %14, %15 : vector<64x128xf32>
    %17 = vector.shape_cast %16 : vector<64x128xf32> to vector<1x64x128xf32>
    %c0_13 = arith.constant 0 : index
    %c0_14 = arith.constant 0 : index
    %c0_15 = arith.constant 0 : index
    %18 = vector.load %arg7[%c0_13, %c0_14, %c0_15] : memref<1x64x128xf32, #tpu.memory_space<vmem>>, vector<1x64x128xf32>
    tpu.vector_store %arg7[%c0_13, %c0_14, %c0_15], %17 {strides = array<i32>} : memref<1x64x128xf32, #tpu.memory_space<vmem>>, vector<1x64x128xf32>,
    return
  }
  func.func @transform_0(%arg0: i32, %arg1: i32) -> (i32, i32, i32) {
    %c0_i32 = arith.constant 0 : i32
    %c0_i32_0 = arith.constant 0 : i32
    return %arg0, %c0_i32, %arg1 : i32, i32, i32
  }
  func.func @transform_1(%arg0: i32, %arg1: i32) -> (i32, i32) {
    %c0_i32 = arith.constant 0 : i32
    %c0_i32_0 = arith.constant 0 : i32
    %c0_i32_1 = arith.constant 0 : i32
    return %c0_i32, %c0_i32_0 : i32, i32
  }
  func.func @transform_2(%arg0: i32, %arg1: i32) -> (i32, i32) {
    %c0_i32 = arith.constant 0 : i32
    %c0_i32_0 = arith.constant 0 : i32
    %c0_i32_1 = arith.constant 0 : i32
    return %c0_i32, %c0_i32_0 : i32, i32
  }
  func.func @transform_3(%arg0: i32, %arg1: i32) -> (i32, i32) {
    %c0_i32 = arith.constant 0 : i32
    %c0_i32_0 = arith.constant 0 : i32
    %c0_i32_1 = arith.constant 0 : i32
    return %c0_i32, %c0_i32_0 : i32, i32
  }
  func.func @transform_4(%arg0: i32, %arg1: i32) -> (i32, i32) {
    %c0_i32 = arith.constant 0 : i32
    %c0_i32_0 = arith.constant 0 : i32
    %c0_i32_1 = arith.constant 0 : i32
    return %c0_i32, %c0_i32_0 : i32, i32
  }
  func.func @transform_5(%arg0: i32, %arg1: i32) -> (i32, i32, i32) {
    %c0_i32 = arith.constant 0 : i32
    %c0_i32_0 = arith.constant 0 : i32
    return %arg0, %c0_i32, %arg1 : i32, i32, i32
  }
}

</mosaic_0001>

<bundles_post_ra>
// kernel: multiview_projection_forward.3
= control target key start
LH: loop header
LB: loop body
LE: loop exit
PB: predicated region body
PF: predicated region fallthrough
CT: control target
= control target key end

     0   :  { %vm15_vm0 = vcmask 1041408   ;;  %v36_v16 = vlaneseq  ;;  %vm33_vm1 = vcmask 1040384   ;;  %s107_s0 = inlined_call_operand.vmem [shape: f32[2,256], index: 0, kind: input, shape index: {}]   ;;  %s108_s1 = inlined_call_operand.vmem [shape: f32[2,256], index: 1, kind: output, shape index: {}]  }
   0x1   :  { %v8_v0 = vld [vmem:[%s107_s0] sm:$0xf] }
   0x2   :  { %10 = vst [vmem:[#allocation1] ss:$4 sm:$0xff] %v8_v0  ;;  %v41_v1 = vmul.f32 %v8_v0, %v8_v0  ;;  %vm91_vm2 = vcmp.lt.s32.totalorder %v36_v16, 256 }
   0x9   :  { %v11_v2 = vld.sshfl [vmem:[#allocation1] sm:$0xff pattern:$0x73625140]  ;;  %v12_v3 = vld.sshfl [vmem:[#allocation1 + $0x8] sm:$0xff pattern:$0x73625140] }
   0xa   :  { %v16_v4 = vsel %vm15_vm0, %v11_v2, 0.0  ;;  %v23_v5 = vsel %vm15_vm0, %v12_v3, 0.0  ;;  %43 = vst [vmem:[#allocation1] ss:$4 sm:$0xff] %v41_v1 }
   0xb   :  { %v17_v6 = vrot.slane %v16_v4, 4  ;;  %v24_v7 = vrot.slane %v23_v5, 4 }
   0xd   :  { %v18_v8 = vadd.f32 %v17_v6, %v16_v4  ;;  %v25_v9 = vadd.f32 %v24_v7, %v23_v5 }
   0xf   :  { %v19_v10 = vrot.slane %v18_v8, 2  ;;  %v26_v11 = vrot.slane %v25_v9, 2 }
  0x11   :  { %v20_v12 = vadd.f32 %v19_v10, %v18_v8  ;;  %v27_v13 = vadd.f32 %v26_v11, %v25_v9  ;;  %v44_v14 = vld.sshfl [vmem:[#allocation1] sm:$0xff pattern:$0x73625140]  ;;  %v45_v15 = vld.sshfl [vmem:[#allocation1 + $0x8] sm:$0xff pattern:$0x73625140] }
  0x12   :  { %v48_v17 = vsel %vm15_vm0, %v44_v14, 0.0  ;;  %v55_v18 = vsel %vm15_vm0, %v45_v15, 0.0 }
  0x13   :  { %v21_v19 = vrot.slane %v20_v12, 1  ;;  %v28_v20 = vrot.slane %v27_v13, 1  ;;  %v49_v21 = vrot.slane %v48_v17, 4  ;;  %v56_v22 = vrot.slane %v55_v18, 4 }
  0x15   :  { %v29_v23 = vadd.f32 %v28_v20, %v27_v13  ;;  %v50_v24 = vadd.f32 %v49_v21, %v48_v17  ;;  %v57_v25 = vadd.f32 %v56_v22, %v55_v18  ;;  %v22_v27 = vadd.f32 %v21_v19, %v20_v12 }
  0x17   :  { %v32_v28 = vrot.slane %v29_v23, 7  ;;  %v51_v29 = vrot.slane %v50_v24, 2  ;;  %v58_v30 = vrot.slane %v57_v25, 2 }
  0x19   :  { %v34_v31 = vsel %vm33_vm1, %v22_v27, %v32_v28  ;;  %v52_v32 = vadd.f32 %v51_v29, %v50_v24  ;;  %v59_v33 = vadd.f32 %v58_v30, %v57_v25 }
  0x1a   :  { %40 = vst.msk [vmem:[%s108_s1] ss:$2 sm:$0x3] %vm91_vm2, %v34_v31 }
  0x1b   :  { %v53_v34 = vrot.slane %v52_v32, 1  ;;  %v60_v35 = vrot.slane %v59_v33, 1 }
  0x1d   :  { %v61_v36 = vadd.f32 %v60_v35, %v59_v33  ;;  %v54_v37 = vadd.f32 %v53_v34, %v52_v32 }
  0x1f   :  { %v64_v38 = vrot.slane %v61_v36, 7 }
  0x21   :  { %v65_v39 = vsel %vm33_vm1, %v54_v37, %v64_v38 }
  0x22   :  { %73 = vst.msk [vmem:[%s108_s1 + $0x1] ss:$2 sm:$0x3] %vm91_vm2, %v65_v39 }

// kernel: multiview_projection_forward.4
= control target key start
LH: loop header
LB: loop body
LE: loop exit
PB: predicated region body
PF: predicated region fallthrough
CT: control target
= control target key end

     0   :  { %s717_s15 = smov 0   ;;  %s719_s16 = smov 0   ;;  %s841_s0 = inlined_call_operand.vmem [shape: f32[2,18,128], index: 0, kind: input, shape index: {}]   ;;  %s842_s1 = inlined_call_operand.vmem [shape: f32[72,18], index: 1, kind: input, shape index: {}]   ;;  %s843_s2 = inlined_call_operand.vmem [shape: bf16[64,72], index: 2, kind: input, shape index: {}]   ;;  %s844_s3 = inlined_call_operand.vmem [shape: f32[2,64,1], index: 3, kind: output, shape index: {0}]   ;;  %s845_s4 = inlined_call_operand.vmem [shape: f32[2,64,1], index: 4, kind: output, shape index: {1}]  }
   0x1   :  { %s721_s17 = smov 0  }
   0x2 LB: > { %s27_s18 = sadd.s32 1, %s686_s16  ;;  %p591_p0 = scmp.ge.s32.totalorder %s690_s17, 1  ;;  %s690_s17 = sphi %s721_s17, %s15_s17   ;;  %s686_s16 = sphi %s719_s16, %s847_s16   ;;  %s682_s15 = sphi %s717_s15, %s846_s15  }
   0x3   : > { %p29_p1 = scmp.ge.s32.totalorder %s27_s18, 2  ;;  %p186_p2 = scmp.lt.s32.totalorder %s690_s17, 3 }
   0x5   : > { %s849_s18 = smov (%p29_p1, %s27_s18), 0  ;;  %p187_p3 = pnand %p591_p0, %p186_p2 }
   0x6   : > { %p222_p4 = scmp.lt.s32.totalorder (!%p187_p3), %s682_s15, 1 }
   0x7   : > { %190 = sbr.rel (%p187_p3) target bundleno = 494 (0x1ee), region = 32 }
   0xc   : > { %s851_s15 = smov (!%p222_p4, %s682_s15), 1  ;;  %vm285_vm0 = vcmask 1041408   ;;  %v248_v3 = vld [vmem:[%s842_s1] sm:$0xff]  ;;  %vm257_vm1 = vcmask 146432   ;;  %v254_v4 = vld [vmem:[%s842_s1 + $0x30] sm:$0xff]  ;;  %v249_v5 = vld [vmem:[%s842_s1 + $0x8] sm:$0xff] }
   0xd   : > { %s643_s19 = smul.u32 24, %s851_s15  ;;  %v255_v6 = vld [vmem:[%s842_s1 + $0x38] sm:$0xff]  ;;  %v250_v7 = vld [vmem:[%s842_s1 + $0x10] sm:$0xff]  ;;  %v256_v8 = vld [vmem:[%s842_s1 + $0x40] sm:$0xff]  ;;  %vm388_vm2 = vcmask 1043456   ;;  %vm375_vm3 = vcmask 588800  }
   0xe   : > { %v251_v9 = vld [vmem:[%s842_s1 + $0x18] sm:$0xff]  ;;  %v252_v10 = vld [vmem:[%s842_s1 + $0x20] sm:$0xff]  ;;  %v253_v11 = vld [vmem:[%s842_s1 + $0x28] sm:$0xff]  ;;  %s629_s27 = sshll.u32 %s851_s15, 6  ;;  %vm437_vm4 = vcmask 7168  }
   0xf   : > { %s229_s22 = scalar_lea.vmem %s841_s0, %s643_s19  ;;  %v631_v36 = vld [vmem:[%s843_s2] sm:$0xff]  ;;  %v633_v37 = vld [vmem:[%s843_s2 + $0x10] sm:$0xff]  ;;  %v632_v38 = vld [vmem:[%s843_s2 + $0x8] sm:$0xff]  ;;  %s793_s30 = scalar_lea.vmem %s844_s3, %s629_s27 }
  0x10   : > { %v247_v0 = vld [vmem:[%s229_s22 + $0x10] sm:$0x3]  ;;  %v246_v1 = vld [vmem:[%s229_s22 + $0x8] sm:$0xff]  ;;  %v245_v2 = vld [vmem:[%s229_s22] sm:$0xff]  ;;  %s798_s7 = scalar_lea.vmem %s845_s4, %s629_s27 }
  0x11   : > { %597 = vmatpush.msk.msra.mxu0 %vm285_vm0, %v247_v0  ;;  %635 = vmatpush.msk.msra.mxu3 %vm285_vm0, %v247_v0  ;;  %v634_v39 = vld [vmem:[%s843_s2 + $0x18] sm:$0xff] }
  0x13   : > { %303 = vmatpush.msra.mxu0 %v246_v1  ;;  %636 = vmatpush.msra.mxu3 %v246_v1 }
  0x15   : > { %304 = vmatpush.msra.mxu0 %v245_v2  ;;  %637 = vmatpush.msra.mxu3 %v245_v2 }
  0x16   : > { %598 = vmatmul.msk.f32.vlgmr.msra.gmra.mxu0 %vm257_vm1, %v248_v3  ;;  %604 = vmatmul.msk.f32.vlgmr.msra.gmra.mxu3 %vm257_vm1, %v254_v4 }
  0x1e   : > { %599 = vmatmul.msk.f32.gmra.mxu0 %vm257_vm1, %v249_v5  ;;  %605 = vmatmul.msk.f32.gmra.mxu3 %vm257_vm1, %v255_v6 }
  0x26   : > { %600 = vmatmul.msk.f32.gmra.mxu0 %vm257_vm1, %v250_v7  ;;  %606 = vmatmul.msk.f32.gmra.mxu3 %vm257_vm1, %v256_v8 }
  0x2e   : > { %601 = vmatmul.msk.f32.gmra.mxu0 %vm257_vm1, %v251_v9 }
  0x36   : > { %602 = vmatmul.msk.f32.gmra.mxu0 %vm257_vm1, %v252_v10 }
  0x3e   : > { %603 = vmatmul.msk.f32.gmra.mxu0 %vm257_vm1, %v253_v11 }
  0x93   : > { %v306_v12 = vpop.f32.mrf.mxu0 }
  0x94   : > { %v333_v34 = vmax.f32 %v306_v12, 0.0 }
  0x99   : > { %v324_v13 = vpop.f32.mrf.mxu3 }
  0x9a   : > { %v339_v21 = vmax.f32 %v324_v13, 0.0 }
  0x9b   : > { %v309_v14 = vpop.f32.mrf.mxu0 }
  0x9c   : > { %v334_v32 = vmax.f32 %v309_v14, 0.0 }
  0x9e   : > { %v342_v35 = vpack.c.bf16 %v334_v32, %v333_v34 }
  0xa1   : > { %v327_v15 = vpop.f32.mrf.mxu3 }
  0xa2   : > { %v340_v22 = vmax.f32 %v327_v15, 0.0 }
  0xa3   : > { %v312_v16 = vpop.f32.mrf.mxu0 }
  0xa4   : > { %v345_v24 = vpack.c.bf16 %v340_v22, %v339_v21  ;;  %v335_v31 = vmax.f32 %v312_v16, 0.0 }
  0xa9   : > { %v330_v17 = vpop.f32.mrf.mxu3 }
  0xaa   : > { %v341_v18 = vmax.f32 %v330_v17, 0.0 }
  0xab   : > { %v315_v19 = vpop.f32.mrf.mxu0 }
  0xac   : > { %v346_v20 = vpack.c.bf16 %v341_v18, %v341_v18  ;;  %v336_v29 = vmax.f32 %v315_v19, 0.0 }
  0xae   : > { %v390_v23 = vsel %vm388_vm2, %v346_v20, 0  ;;  %v343_v33 = vpack.c.bf16 %v336_v29, %v335_v31 }
  0xaf   : > { %395 = vmatpush.bf16.msra.mxu1 %v390_v23  ;;  %638 = vmatpush.bf16.msra.mxu2 %v390_v23 }
  0xb3   : > { %v318_v25 = vpop.f32.mrf.mxu0  ;;  %396 = vmatpush.bf16.msra.mxu1 %v345_v24  ;;  %639 = vmatpush.bf16.msra.mxu2 %v345_v24 }
  0xb4   : > { %v337_v27 = vmax.f32 %v318_v25, 0.0 }
  0xbb   : > { %v321_v26 = vpop.f32.mrf.mxu0 }
  0xbc   : > { %v338_v28 = vmax.f32 %v321_v26, 0.0 }
  0xbe   : > { %v344_v30 = vpack.c.bf16 %v338_v28, %v337_v27 }
  0xc0   : > { %397 = vmatpush.bf16.msra.mxu1 %v344_v30  ;;  %640 = vmatpush.bf16.msra.mxu2 %v344_v30 }
  0xc4   : > { %398 = vmatpush.bf16.msra.mxu1 %v343_v33  ;;  %641 = vmatpush.bf16.msra.mxu2 %v343_v33 }
  0xc8   : > { %399 = vmatpush.bf16.msra.mxu1 %v342_v35  ;;  %642 = vmatpush.bf16.msra.mxu2 %v342_v35 }
  0xcb   : > { %623 = vmatmul.msk.bf16.vlgmr.msra.gmra.mxu1 %vm375_vm3, %v631_v36  ;;  %625 = vmatmul.msk.bf16.vlgmr.msra.gmra.mxu2 %vm375_vm3, %v633_v37 }
  0xdb   : > { %624 = vmatmul.msk.bf16.gmra.mxu1 %vm375_vm3, %v632_v38  ;;  %626 = vmatmul.msk.bf16.gmra.mxu2 %vm375_vm3, %v634_v39 }
 0x148   : > { %v401_v40 = vpop.f32.mrf.mxu1 }
 0x149   : > { %421 = vadd.xlane.f32.xlu0 %v401_v40  ;;  %v446_v41 = vmul.f32 %v401_v40, %v401_v40 }
 0x14b   : > { %454 = vadd.xlane.f32.xlu2 %v446_v41 }
 0x14e   : > { %v411_v42 = vpop.f32.mrf.mxu2 }
 0x14f   : > { %v450_v44 = vmul.f32 %v411_v42, %v411_v42 }
 0x150   : > { %v403_v43 = vpop.f32.mrf.mxu1 }
 0x151   : > { %423 = vadd.xlane.f32.xlu0 %v403_v43  ;;  %v447_v47 = vmul.f32 %v403_v43, %v403_v43 }
 0x153   : > { %429 = vadd.xlane.f32.xlu2 %v411_v42 }
 0x156   : > { %v413_v46 = vpop.f32.mrf.mxu2 }
 0x157   : > { %v451_v55 = vmul.f32 %v413_v46, %v413_v46 }
 0x158   : > { %v406_v45 = vpop.f32.mrf.mxu1 }
 0x159   : > { %462 = vadd.xlane.f32.xlu0 %v450_v44  ;;  %425 = vadd.xlane.f32.xlu1 %v406_v45  ;;  %v448_v48 = vmul.f32 %v406_v45, %v406_v45 }
 0x15b   : > { %431 = vadd.xlane.f32.xlu2 %v413_v46 }
 0x15e   : > { %v416_v51 = vpop.f32.mrf.mxu2 }
 0x15f   : > { %v452_v52 = vmul.f32 %v416_v51, %v416_v51 }
 0x160   : > { %v408_v49 = vpop.f32.mrf.mxu1 }
 0x161   : > { %v449_v50 = vmul.f32 %v408_v49, %v408_v49  ;;  %456 = vadd.xlane.f32.xlu0 %v447_v47  ;;  %458 = vadd.xlane.f32.xlu1 %v448_v48 }
 0x163   : > { %460 = vadd.xlane.f32.xlu2 %v449_v50 }
 0x166   : > { %v418_v53 = vpop.f32.mrf.mxu2 }
 0x167   : > { %v453_v54 = vmul.f32 %v418_v53, %v418_v53 }
 0x169   : > { %433 = vadd.xlane.f32.xlu0 %v416_v51  ;;  %427 = vadd.xlane.f32.xlu1 %v408_v49 }
 0x16b   : > { %466 = vadd.xlane.f32.xlu2 %v452_v52 }
 0x171   : > { %468 = vadd.xlane.f32.xlu0 %v453_v54  ;;  %435 = vadd.xlane.f32.xlu1 %v418_v53 }
 0x179   : > { %464 = vadd.xlane.f32.xlu1 %v451_v55 }
 0x1bc   : > { %v422_v56 = vpop.xlane.xlu0 %421 }
 0x1bd   : > { %438 = vst.msk [vmem:[%s793_s30] sm:$0xff] %vm437_vm4, %v422_v56 }
 0x1be   : > { %v455_v57 = vpop.xlane.xlu2 %454 }
 0x1bf   : > { %470 = vst.msk [vmem:[%s798_s7] sm:$0xff] %vm437_vm4, %v455_v57 }
 0x1c4   : > { %v424_v58 = vpop.xlane.xlu0 %423 }
 0x1c5   : > { %439 = vst.msk [vmem:[%s793_s30 + $0x8] sm:$0xff] %vm437_vm4, %v424_v58 }
 0x1c6   : > { %v430_v59 = vpop.xlane.xlu2 %429 }
 0x1c7   : > { %442 = vst.msk [vmem:[%s793_s30 + $0x20] sm:$0xff] %vm437_vm4, %v430_v59 }
 0x1cc   : > { %v463_v60 = vpop.xlane.xlu0 %462  ;;  %v426_v61 = vpop.xlane.xlu1 %425 }
 0x1cd   : > { %474 = vst.msk [vmem:[%s798_s7 + $0x20] sm:$0xff] %vm437_vm4, %v463_v60 }
 0x1ce   : > { %440 = vst.msk [vmem:[%s793_s30 + $0x10] sm:$0xff] %vm437_vm4, %v426_v61  ;;  %v432_v62 = vpop.xlane.xlu2 %431 }
 0x1cf   : > { %443 = vst.msk [vmem:[%s793_s30 + $0x28] sm:$0xff] %vm437_vm4, %v432_v62 }
 0x1d4   : > { %v457_v63 = vpop.xlane.xlu0 %456  ;;  %v459_v0 = vpop.xlane.xlu1 %458 }
 0x1d5   : > { %471 = vst.msk [vmem:[%s798_s7 + $0x8] sm:$0xff] %vm437_vm4, %v457_v63 }
 0x1d6   : > { %472 = vst.msk [vmem:[%s798_s7 + $0x10] sm:$0xff] %vm437_vm4, %v459_v0  ;;  %v461_v1 = vpop.xlane.xlu2 %460 }
 0x1d7   : > { %473 = vst.msk [vmem:[%s798_s7 + $0x18] sm:$0xff] %vm437_vm4, %v461_v1 }
 0x1dc   : > { %v434_v2 = vpop.xlane.xlu0 %433  ;;  %v428_v3 = vpop.xlane.xlu1 %427 }
 0x1dd   : > { %444 = vst.msk [vmem:[%s793_s30 + $0x30] sm:$0xff] %vm437_vm4, %v434_v2 }
 0x1de   : > { %441 = vst.msk [vmem:[%s793_s30 + $0x18] sm:$0xff] %vm437_vm4, %v428_v3  ;;  %v467_v4 = vpop.xlane.xlu2 %466 }
 0x1df   : > { %476 = vst.msk [vmem:[%s798_s7 + $0x30] sm:$0xff] %vm437_vm4, %v467_v4 }
 0x1e4   : > { %v469_v5 = vpop.xlane.xlu0 %468  ;;  %v436_v6 = vpop.xlane.xlu1 %435 }
 0x1e5   : > { %477 = vst.msk [vmem:[%s798_s7 + $0x38] sm:$0xff] %vm437_vm4, %v469_v5 }
 0x1e6   : > { %445 = vst.msk [vmem:[%s793_s30 + $0x38] sm:$0xff] %vm437_vm4, %v436_v6 }
 0x1ec   : > { %v465_v7 = vpop.xlane.xlu1 %464 }
 0x1ed   : > { %475 = vst.msk [vmem:[%s798_s7 + $0x28] sm:$0xff] %vm437_vm4, %v465_v7 }
 0x1ee PF: > { %s15_s17 = sadd.s32 1, %s690_s17   ;;  %s846_s15 = smov %s686_s16 }
 0x1ef   : > { %p12_p5 = scmp.ge.s32.totalorder %s15_s17, 4   ;;  %s847_s16 = smov %s849_s18 }
 0x1f1   :  { %14 = sbr.rel (!%p12_p5) target bundleno = 2 (0x2), region = 74 }

// kernel: multiview_projection_forward.5
= control target key start
LH: loop header
LB: loop body
LE: loop exit
PB: predicated region body
PF: predicated region fallthrough
CT: control target
= control target key end

     0   :  { %s781_s18 = smov 0   ;;  %s783_s19 = smov 0   ;;  %s924_s0 = inlined_call_operand.vmem [shape: f32[2,18,128], index: 0, kind: input, shape index: {}]   ;;  %s925_s1 = inlined_call_operand.vmem [shape: f32[72,18], index: 1, kind: input, shape index: {}]   ;;  %s926_s2 = inlined_call_operand.vmem [shape: bf16[64,72], index: 2, kind: input, shape index: {}]   ;;  %s927_s3 = inlined_call_operand.vmem [shape: f32[64,1], index: 3, kind: input, shape index: {}]   ;;  %s928_s4 = inlined_call_operand.vmem [shape: f32[64,1], index: 4, kind: input, shape index: {}]   ;;  %s929_s5 = inlined_call_operand.vmem [shape: f32[2,64,128], index: 5, kind: output, shape index: {}]  }
   0x1   :  { %s785_s20 = smov 0  }
   0x2 LB: > { %s27_s21 = sadd.s32 1, %s744_s19  ;;  %p648_p0 = scmp.ge.s32.totalorder %s748_s20, 1  ;;  %s748_s20 = sphi %s785_s20, %s15_s20   ;;  %s744_s19 = sphi %s783_s19, %s931_s19   ;;  %s740_s18 = sphi %s781_s18, %s930_s18  }
   0x3   : > { %p29_p1 = scmp.ge.s32.totalorder %s27_s21, 2  ;;  %p206_p2 = scmp.lt.s32.totalorder %s748_s20, 3 }
   0x5   : > { %s933_s21 = smov (%p29_p1, %s27_s21), 0  ;;  %p207_p3 = pnand %p648_p0, %p206_p2 }
   0x6   : > { %p240_p4 = scmp.lt.s32.totalorder (!%p207_p3), %s740_s18, 1 }
   0x7   : > { %210 = sbr.rel (%p207_p3) target bundleno = 366 (0x16e), region = 40 }
   0xc   : > { %s935_s18 = smov (!%p240_p4, %s740_s18), 1  ;;  %vm297_vm0 = vcmask 1041408   ;;  %v260_v3 = vld [vmem:[%s925_s1] sm:$0xff]  ;;  %vm269_vm1 = vcmask 146432   ;;  %v266_v4 = vld [vmem:[%s925_s1 + $0x30] sm:$0xff]  ;;  %v261_v5 = vld [vmem:[%s925_s1 + $0x8] sm:$0xff] }
   0xd   : > { %s697_s22 = smul.u32 24, %s935_s18  ;;  %v267_v6 = vld [vmem:[%s925_s1 + $0x38] sm:$0xff]  ;;  %v262_v7 = vld [vmem:[%s925_s1 + $0x10] sm:$0xff]  ;;  %v268_v8 = vld [vmem:[%s925_s1 + $0x40] sm:$0xff]  ;;  %v750_v13 = vmov 0   ;;  %vm400_vm2 = vcmask 1043456  }
   0xe   : > { %v263_v9 = vld [vmem:[%s925_s1 + $0x18] sm:$0xff]  ;;  %v264_v10 = vld [vmem:[%s925_s1 + $0x20] sm:$0xff]  ;;  %v265_v11 = vld [vmem:[%s925_s1 + $0x28] sm:$0xff]  ;;  %723 = vset.pattern.permute.xlu0 %v750_v13  ;;  %724 = vset.pattern.permute.xlu1 %v750_v13  ;;  %vm387_vm3 = vcmask 588800   ;;  %s684_s17 = sshll.u32 %s935_s18, 6 }
   0xf   : > { %s247_s25 = scalar_lea.vmem %s924_s0, %s697_s22  ;;  %v433_v12 = vld [vmem:[%s927_s3] sm:$0xff]  ;;  %725 = vset.pattern.permute.xlu2 %v750_v13  ;;  %v434_v14 = vld [vmem:[%s927_s3 + $0x8] sm:$0xff]  ;;  %v435_v16 = vld [vmem:[%s927_s3 + $0x10] sm:$0xff]  ;;  %s905_s24 = scalar_lea.vmem %s929_s5, %s684_s17 }
  0x10   : > { %v259_v0 = vld [vmem:[%s247_s25 + $0x10] sm:$0x3]  ;;  %v258_v1 = vld [vmem:[%s247_s25 + $0x8] sm:$0xff]  ;;  %v257_v2 = vld [vmem:[%s247_s25] sm:$0xff]  ;;  %443 = vperm.xlu0 %723, %v433_v12   ;;  %453 = vperm.xlu1 %724, %v435_v16  }
  0x11   : > { %652 = vmatpush.msk.msra.mxu0 %vm297_vm0, %v259_v0  ;;  %689 = vmatpush.msk.msra.mxu3 %vm297_vm0, %v259_v0  ;;  %v439_v17 = vld [vmem:[%s927_s3 + $0x30] sm:$0xff]  ;;  %v436_v20 = vld [vmem:[%s927_s3 + $0x18] sm:$0xff]  ;;  %v490_v21 = vld [vmem:[%s928_s4 + $0x8] sm:$0xff] }
  0x12   : > { %v440_v24 = vld [vmem:[%s927_s3 + $0x38] sm:$0xff]  ;;  %v493_v25 = vld [vmem:[%s928_s4 + $0x20] sm:$0xff]  ;;  %v491_v30 = vld [vmem:[%s928_s4 + $0x10] sm:$0xff] }
  0x13   : > { %315 = vmatpush.msra.mxu0 %v258_v1  ;;  %690 = vmatpush.msra.mxu3 %v258_v1  ;;  %v437_v29 = vld [vmem:[%s927_s3 + $0x20] sm:$0xff]  ;;  %v496_v31 = vld [vmem:[%s928_s4 + $0x38] sm:$0xff]  ;;  %v438_v37 = vld [vmem:[%s927_s3 + $0x28] sm:$0xff] }
  0x14   : > { %463 = vperm.xlu2 %725, %v437_v29   ;;  %v494_v38 = vld [vmem:[%s928_s4 + $0x28] sm:$0xff]  ;;  %v489_v41 = vld [vmem:[%s928_s4] sm:$0xff]  ;;  %v492_v49 = vld [vmem:[%s928_s4 + $0x18] sm:$0xff] }
  0x15   : > { %316 = vmatpush.msra.mxu0 %v257_v2  ;;  %691 = vmatpush.msra.mxu3 %v257_v2  ;;  %v685_v52 = vld [vmem:[%s926_s2] sm:$0xff]  ;;  %v687_v53 = vld [vmem:[%s926_s2 + $0x10] sm:$0xff]  ;;  %v686_v55 = vld [vmem:[%s926_s2 + $0x8] sm:$0xff] }
  0x16   : > { %653 = vmatmul.msk.f32.vlgmr.msra.gmra.mxu0 %vm269_vm1, %v260_v3  ;;  %659 = vmatmul.msk.f32.vlgmr.msra.gmra.mxu3 %vm269_vm1, %v266_v4  ;;  %v495_v54 = vld [vmem:[%s928_s4 + $0x30] sm:$0xff]  ;;  %v688_v56 = vld [vmem:[%s926_s2 + $0x18] sm:$0xff] }
  0x18   : > { %448 = vperm.xlu0 %723, %v434_v14   ;;  %458 = vperm.xlu1 %724, %v436_v20  }
  0x1c   : > { %468 = vperm.xlu2 %725, %v438_v37  }
  0x1e   : > { %654 = vmatmul.msk.f32.gmra.mxu0 %vm269_vm1, %v261_v5  ;;  %660 = vmatmul.msk.f32.gmra.mxu3 %vm269_vm1, %v267_v6 }
  0x20   : > { %473 = vperm.xlu0 %723, %v439_v17   ;;  %478 = vperm.xlu1 %724, %v440_v24  }
  0x24   : > { %499 = vperm.xlu2 %725, %v489_v41  }
  0x26   : > { %655 = vmatmul.msk.f32.gmra.mxu0 %vm269_vm1, %v262_v7  ;;  %661 = vmatmul.msk.f32.gmra.mxu3 %vm269_vm1, %v268_v8 }
  0x28   : > { %504 = vperm.xlu0 %723, %v490_v21   ;;  %509 = vperm.xlu1 %724, %v491_v30  }
  0x2c   : > { %514 = vperm.xlu2 %725, %v492_v49  }
  0x2e   : > { %656 = vmatmul.msk.f32.gmra.mxu0 %vm269_vm1, %v263_v9 }
  0x30   : > { %519 = vperm.xlu0 %723, %v493_v25   ;;  %524 = vperm.xlu1 %724, %v494_v38  }
  0x34   : > { %529 = vperm.xlu2 %725, %v495_v54  }
  0x36   : > { %657 = vmatmul.msk.f32.gmra.mxu0 %vm269_vm1, %v264_v10 }
  0x38   : > { %534 = vperm.xlu0 %723, %v496_v31  }
  0x3e   : > { %658 = vmatmul.msk.f32.gmra.mxu0 %vm269_vm1, %v265_v11 }
  0x6e   : > { %v464_v60 = vpop.permute.xlu2 %463 }
  0x76   : > { %v469_v63 = vpop.permute.xlu2 %468 }
  0x7e   : > { %v500_v4 = vpop.permute.xlu2 %499 }
  0x82   : > { %v444_v57 = vpop.permute.xlu0 %443  ;;  %v454_v58 = vpop.permute.xlu1 %453 }
  0x86   : > { %v515_v17 = vpop.permute.xlu2 %514 }
  0x8a   : > { %v449_v59 = vpop.permute.xlu0 %448  ;;  %v459_v61 = vpop.permute.xlu1 %458 }
  0x8e   : > { %v530_v29 = vpop.permute.xlu2 %529 }
  0x92   : > { %v474_v62 = vpop.permute.xlu0 %473  ;;  %v479_v0 = vpop.permute.xlu1 %478 }
  0x93   : > { %v318_v15 = vpop.f32.mrf.mxu0 }
  0x94   : > { %v345_v50 = vmax.f32 %v318_v15, 0.0 }
  0x99   : > { %v336_v18 = vpop.f32.mrf.mxu3 }
  0x9a   : > { %v351_v33 = vmax.f32 %v336_v18, 0.0  ;;  %v505_v1 = vpop.permute.xlu0 %504  ;;  %v510_v7 = vpop.permute.xlu1 %509 }
  0x9b   : > { %v321_v19 = vpop.f32.mrf.mxu0 }
  0x9c   : > { %v346_v47 = vmax.f32 %v321_v19, 0.0 }
  0x9e   : > { %v354_v51 = vpack.c.bf16 %v346_v47, %v345_v50 }
  0xa1   : > { %v339_v22 = vpop.f32.mrf.mxu3 }
  0xa2   : > { %v352_v34 = vmax.f32 %v339_v22, 0.0  ;;  %v520_v10 = vpop.permute.xlu0 %519  ;;  %v525_v20 = vpop.permute.xlu1 %524 }
  0xa3   : > { %v324_v23 = vpop.f32.mrf.mxu0 }
  0xa4   : > { %v357_v36 = vpack.c.bf16 %v352_v34, %v351_v33  ;;  %v347_v46 = vmax.f32 %v324_v23, 0.0 }
  0xa9   : > { %v342_v26 = vpop.f32.mrf.mxu3 }
  0xaa   : > { %v353_v27 = vmax.f32 %v342_v26, 0.0  ;;  %v535_v38 = vpop.permute.xlu0 %534 }
  0xab   : > { %v327_v28 = vpop.f32.mrf.mxu0 }
  0xac   : > { %v358_v32 = vpack.c.bf16 %v353_v27, %v353_v27  ;;  %v348_v44 = vmax.f32 %v327_v28, 0.0 }
  0xae   : > { %v402_v35 = vsel %vm400_vm2, %v358_v32, 0  ;;  %v355_v48 = vpack.c.bf16 %v348_v44, %v347_v46 }
  0xaf   : > { %407 = vmatpush.bf16.msra.mxu1 %v402_v35  ;;  %692 = vmatpush.bf16.msra.mxu2 %v402_v35 }
  0xb3   : > { %v330_v39 = vpop.f32.mrf.mxu0  ;;  %408 = vmatpush.bf16.msra.mxu1 %v357_v36  ;;  %693 = vmatpush.bf16.msra.mxu2 %v357_v36 }
  0xb4   : > { %v349_v42 = vmax.f32 %v330_v39, 0.0 }
  0xbb   : > { %v333_v40 = vpop.f32.mrf.mxu0 }
  0xbc   : > { %v350_v43 = vmax.f32 %v333_v40, 0.0 }
  0xbe   : > { %v356_v45 = vpack.c.bf16 %v350_v43, %v349_v42 }
  0xc0   : > { %409 = vmatpush.bf16.msra.mxu1 %v356_v45  ;;  %694 = vmatpush.bf16.msra.mxu2 %v356_v45 }
  0xc4   : > { %410 = vmatpush.bf16.msra.mxu1 %v355_v48  ;;  %695 = vmatpush.bf16.msra.mxu2 %v355_v48 }
  0xc8   : > { %411 = vmatpush.bf16.msra.mxu1 %v354_v51  ;;  %696 = vmatpush.bf16.msra.mxu2 %v354_v51 }
  0xcb   : > { %678 = vmatmul.msk.bf16.vlgmr.msra.gmra.mxu1 %vm387_vm3, %v685_v52  ;;  %680 = vmatmul.msk.bf16.vlgmr.msra.gmra.mxu2 %vm387_vm3, %v687_v53 }
  0xdb   : > { %679 = vmatmul.msk.bf16.gmra.mxu1 %vm387_vm3, %v686_v55  ;;  %681 = vmatmul.msk.bf16.gmra.mxu2 %vm387_vm3, %v688_v56 }
 0x148   : > { %v413_v2 = vpop.f32.mrf.mxu1 }
 0x149   : > { %v481_v3 = vmul.f32 %v444_v57, %v413_v2 }
 0x14b   : > { %v537_v5 = vadd.f32 %v500_v4, %v481_v3 }
 0x14d   : > { %v545_v6 = vmax.f32 %v537_v5, 0.0 }
 0x14e   : > { %v423_v8 = vpop.f32.mrf.mxu2 }
 0x14f   : > { %553 = vst [vmem:[%s905_s24] sm:$0xff] %v545_v6  ;;  %v485_v9 = vmul.f32 %v464_v60, %v423_v8 }
 0x150   : > { %v415_v11 = vpop.f32.mrf.mxu1 }
 0x151   : > { %v541_v12 = vadd.f32 %v520_v10, %v485_v9  ;;  %v482_v13 = vmul.f32 %v449_v59, %v415_v11 }
 0x153   : > { %v549_v14 = vmax.f32 %v541_v12, 0.0  ;;  %v538_v15 = vadd.f32 %v505_v1, %v482_v13 }
 0x155   : > { %557 = vst [vmem:[%s905_s24 + $0x20] sm:$0xff] %v549_v14  ;;  %v546_v16 = vmax.f32 %v538_v15, 0.0 }
 0x156   : > { %v425_v18 = vpop.f32.mrf.mxu2 }
 0x157   : > { %554 = vst [vmem:[%s905_s24 + $0x8] sm:$0xff] %v546_v16  ;;  %v486_v19 = vmul.f32 %v469_v63, %v425_v18 }
 0x158   : > { %v418_v21 = vpop.f32.mrf.mxu1 }
 0x159   : > { %v542_v22 = vadd.f32 %v525_v20, %v486_v19  ;;  %v483_v23 = vmul.f32 %v454_v58, %v418_v21 }
 0x15b   : > { %v550_v24 = vmax.f32 %v542_v22, 0.0  ;;  %v539_v25 = vadd.f32 %v510_v7, %v483_v23 }
 0x15d   : > { %558 = vst [vmem:[%s905_s24 + $0x28] sm:$0xff] %v550_v24  ;;  %v547_v26 = vmax.f32 %v539_v25, 0.0 }
 0x15e   : > { %v428_v27 = vpop.f32.mrf.mxu2 }
 0x15f   : > { %555 = vst [vmem:[%s905_s24 + $0x10] sm:$0xff] %v547_v26  ;;  %v487_v28 = vmul.f32 %v474_v62, %v428_v27 }
 0x160   : > { %v420_v30 = vpop.f32.mrf.mxu1 }
 0x161   : > { %v543_v31 = vadd.f32 %v530_v29, %v487_v28  ;;  %v484_v32 = vmul.f32 %v459_v61, %v420_v30 }
 0x163   : > { %v551_v33 = vmax.f32 %v543_v31, 0.0  ;;  %v540_v34 = vadd.f32 %v515_v17, %v484_v32 }
 0x165   : > { %559 = vst [vmem:[%s905_s24 + $0x30] sm:$0xff] %v551_v33  ;;  %v548_v35 = vmax.f32 %v540_v34, 0.0 }
 0x166   : > { %v430_v36 = vpop.f32.mrf.mxu2 }
 0x167   : > { %556 = vst [vmem:[%s905_s24 + $0x18] sm:$0xff] %v548_v35  ;;  %v488_v37 = vmul.f32 %v479_v0, %v430_v36 }
 0x169   : > { %v544_v39 = vadd.f32 %v535_v38, %v488_v37 }
 0x16b   : > { %v552_v40 = vmax.f32 %v544_v39, 0.0 }
 0x16d   : > { %560 = vst [vmem:[%s905_s24 + $0x38] sm:$0xff] %v552_v40 }
 0x16e PF: > { %s15_s20 = sadd.s32 1, %s748_s20   ;;  %s930_s18 = smov %s744_s19 }
 0x16f   : > { %p12_p5 = scmp.ge.s32.totalorder %s15_s20, 4   ;;  %s931_s19 = smov %s933_s21 }
 0x171   :  { %14 = sbr.rel (!%p12_p5) target bundleno = 2 (0x2), region = 70 }

</bundles_post_ra>
